<compile_context>
chip_gen: v7x
topology: tpu7x:2x2x1
jax: 0.10.0
libtpu: 0.0.40
codegen_flags: <defaults>
</compile_context>

<pallas_src>
import functools

import jax
import jax.numpy as jnp
from jax import lax
from jax.experimental import pallas as pl
from jax.experimental.pallas import tpu as pltpu


def _make_kernel(method: str, norm: bool, S: int, D: int, eps: float = 1e-5):
    def kernel(x_ref, gb_ref, w_ref, b_ref, o_ref):
        # x_ref: (TN, S*D) lane-dense tile; subword s lives in lanes [s*D, (s+1)*D).
        def sub(s):
            return x_ref[:, s * D:(s + 1) * D].astype(jnp.float32)

        if method in ("sum", "mean"):
            agg = sub(0)
            for s in range(1, S):
                agg = agg + sub(s)
            if method == "mean":
                agg = agg * jnp.float32(1.0 / S)
        elif method == "max":
            agg = sub(0)
            for s in range(1, S):
                agg = jnp.maximum(agg, sub(s))
        else:  # weighted_sum: Linear(S -> 1) over the subword axis (values path)
            agg = sub(0) * w_ref[0]
            for s in range(1, S):
                agg = agg + sub(s) * w_ref[s]
            agg = agg + b_ref[0]

        if norm:
            gb = gb_ref[...].astype(jnp.float32)       # (2, D): [gamma; beta]
            gamma = gb[0:1, :]
            beta = gb[1:2, :]
            mu = jnp.mean(agg, axis=-1, keepdims=True)
            ms = jnp.mean(agg * agg, axis=-1, keepdims=True)
            var = ms - mu * mu                         # one-pass variance
            inv = lax.rsqrt(var + jnp.float32(eps))    # EUP
            scale = inv * gamma                        # (TN, D)
            agg = agg * scale + (beta - mu * scale)    # folded affine (one FMA)

        o_ref[...] = agg.astype(o_ref.dtype)

    return kernel


@functools.partial(jax.jit, static_argnames=("method", "norm", "row_tile"))
def word_embeddings(x, gamma, beta, w, b, *, method="sum", norm=True, row_tile=1024):
    """x: (B, W, S, D). Aggregate over S, optional LayerNorm over D. Returns (B, W, D)."""
    B, W, S, D = x.shape
    N = B * W
    itemsize = jnp.dtype(x.dtype).itemsize

    # Lane-dense layout: (N, S*D) -> contiguous DMA, no sublane padding of S.
    x2 = x.reshape(N, S * D)

    # Effective row tile: >= 8 sublanes, no larger than (rounded-up) N, and capped
    # so double-buffered in+out tiles stay under ~12 MiB (fits v5e's 16 MiB scoped
    # default and v7x's 32 MiB scoped / 64 MiB physical with headroom).
    eff = min(int(row_tile), max(8, ((N + 7) // 8) * 8))
    bytes_per_row = (S * D + D) * itemsize
    while eff > 8 and 2 * eff * bytes_per_row > 12 * 1024 * 1024:
        eff //= 2
    eff = max(8, (eff // 8) * 8)

    # Pad N up to a multiple of the tile instead of asserting divisibility.
    Np = ((N + eff - 1) // eff) * eff
    if Np != N:
        x2 = jnp.pad(x2, ((0, Np - N), (0, 0)))

    gb = jnp.stack([gamma.reshape(D), beta.reshape(D)], axis=0)   # (2, D) VMEM
    w2 = w.reshape(S).astype(jnp.float32)                         # (S,)  SMEM
    b2 = b.reshape(1).astype(jnp.float32)                         # (1,)  SMEM

    kernel = _make_kernel(method, norm, S, D)

    out = pl.pallas_call(
        kernel,
        out_shape=jax.ShapeDtypeStruct((Np, D), x.dtype),
        grid_spec=pltpu.PrefetchScalarGridSpec(
            num_scalar_prefetch=0,
            grid=(Np // eff,),
            in_specs=[
                pl.BlockSpec((eff, S * D), lambda i: (i, 0)),
                pl.BlockSpec((2, D), lambda i: (0, 0)),
                pl.BlockSpec(memory_space=pltpu.MemorySpace.SMEM),
                pl.BlockSpec(memory_space=pltpu.MemorySpace.SMEM),
            ],
            out_specs=pl.BlockSpec((eff, D), lambda i: (i, 0)),
        ),
        compiler_params=pltpu.CompilerParams(dimension_semantics=("parallel",)),
        cost_estimate=pl.CostEstimate(
            flops=Np * S * D + (8 * Np * D if norm else 0),
            transcendentals=Np if norm else 0,
            bytes_accessed=Np * (S + 1) * D * itemsize,
        ),
    )(x2, gb, w2, b2)

    return out[:N].reshape(B, W, D)


def _reference(x, gamma, beta, w, b, method="sum", norm=True, eps=1e-5):
    if method == "sum":
        agg = x.sum(axis=2)
    elif method == "mean":
        agg = x.mean(axis=2)
    elif method == "max":
        agg = x.max(axis=2)
    else:
        agg = jnp.einsum("bwsd,s->bwd", x, w) + b[0]
    if norm:
        mu = agg.mean(axis=-1, keepdims=True)
        var = ((agg - mu) ** 2).mean(axis=-1, keepdims=True)
        agg = (agg - mu) / jnp.sqrt(var + eps) * gamma + beta
    return agg


if __name__ == "__main__":
    key = jax.random.PRNGKey(0)
    kx, kg, kb, kw, kbias, kx2 = jax.random.split(key, 6)

    # Small shapes consistent with the module: batch=2, words=8, subwords=4, D=128.
    B, W, S, D = 2, 8, 4, 128
    x = jax.random.normal(kx, (B, W, S, D), dtype=jnp.float32)
    gamma = 1.0 + 0.1 * jax.random.normal(kg, (D,), dtype=jnp.float32)
    beta = 0.1 * jax.random.normal(kb, (D,), dtype=jnp.float32)
    w = jax.random.normal(kw, (S,), dtype=jnp.float32) / jnp.sqrt(S)
    b = jax.random.normal(kbias, (1,), dtype=jnp.float32) * 0.01

    for method in ("sum", "mean", "max", "weighted_sum"):
        for norm in (True, False):
            out = jax.block_until_ready(
                word_embeddings(x, gamma, beta, w, b, method=method, norm=norm)
            )
            ref = _reference(x, gamma, beta, w, b, method=method, norm=norm)
            assert out.shape == (B, W, D)
            assert jnp.allclose(out, ref, atol=1e-4, rtol=1e-4), f"mismatch {method}/{norm}"

    # Ragged B*W (not a multiple of 8) to exercise the padded-tail path.
    B2, W2 = 3, 37
    xr = jax.random.normal(kx2, (B2, W2, S, D), dtype=jnp.float32)
    outr = jax.block_until_ready(word_embeddings(xr, gamma, beta, w, b, method="sum"))
    refr = _reference(xr, gamma, beta, w, b, method="sum")
    assert jnp.allclose(outr, refr, atol=1e-4, rtol=1e-4), "mismatch ragged"

    print("KERNEL_OK")
</pallas_src>

<mosaic_0001>
module attributes {stable_mosaic.version = 11 : i64} {
  func.func @kernel(%arg0: i32, %arg1: memref<16x512xf32, #tpu.memory_space<vmem>>, %arg2: memref<2x128xf32, #tpu.memory_space<vmem>>, %arg3: memref<4xf32, #tpu.memory_space<smem>>, %arg4: memref<1xf32, #tpu.memory_space<smem>>, %arg5: memref<16x128xf32, #tpu.memory_space<vmem>>) attributes {dimension_semantics = [#tpu.dimension_semantics<parallel>], iteration_bounds = array<i64: 1>, scalar_prefetch = 0 : i64, scratch_operands = 0 : i64, tpu.core_type = #tpu.core_type<tc>, window_params = [{transform_indices = @transform_0, window_bounds = array<i64: 16, 512>}, {pipeline_mode = #tpu.pipeline_mode<synchronous>, transform_indices = @transform_1, window_bounds = array<i64: 2, 128>}, {transform_indices = @transform_2, window_bounds = array<i64: 4>}, {transform_indices = @transform_3, window_bounds = array<i64: 1>}, {transform_indices = @transform_4, window_bounds = array<i64: 16, 128>}]} {
    %c0 = arith.constant 0 : index
    %c0_0 = arith.constant 0 : index
    %0 = vector.load %arg1[%c0, %c0_0] : memref<16x512xf32, #tpu.memory_space<vmem>>, vector<16x128xf32>
    %c0_1 = arith.constant 0 : index
    %c128 = arith.constant 128 : index
    %1 = vector.load %arg1[%c0_1, %c128] : memref<16x512xf32, #tpu.memory_space<vmem>>, vector<16x128xf32>
    %2 = arith.addf %0, %1 : vector<16x128xf32>
    %c0_2 = arith.constant 0 : index
    %c256 = arith.constant 256 : index
    %3 = vector.load %arg1[%c0_2, %c256] : memref<16x512xf32, #tpu.memory_space<vmem>>, vector<16x128xf32>
    %4 = arith.addf %2, %3 : vector<16x128xf32>
    %c0_3 = arith.constant 0 : index
    %c384 = arith.constant 384 : index
    %5 = vector.load %arg1[%c0_3, %c384] : memref<16x512xf32, #tpu.memory_space<vmem>>, vector<16x128xf32>
    %6 = arith.addf %4, %5 : vector<16x128xf32>
    %c0_4 = arith.constant 0 : index
    %c0_5 = arith.constant 0 : index
    %7 = vector.load %arg2[%c0_4, %c0_5] : memref<2x128xf32, #tpu.memory_space<vmem>>, vector<2x128xf32>
    %8 = vector.extract_strided_slice %7 {offsets = [0, 0], sizes = [1, 128], strides = [1, 1]} : vector<2x128xf32> to vector<1x128xf32>
    %9 = vector.extract_strided_slice %7 {offsets = [1, 0], sizes = [1, 128], strides = [1, 1]} : vector<2x128xf32> to vector<1x128xf32>
    %cst = arith.constant dense<0.000000e+00> : vector<16xf32>
    %10 = vector.multi_reduction <add>, %6, %cst [1] : vector<16x128xf32> to vector<16xf32>
    %11 = vector.shape_cast %10 : vector<16xf32> to vector<16x1xf32>
    %cst_6 = arith.constant 1.280000e+02 : f32
    %12 = vector.broadcast %cst_6 : f32 to vector<16x1xf32>
    %13 = arith.divf %11, %12 : vector<16x1xf32>
    %14 = arith.mulf %6, %6 : vector<16x128xf32>
    %cst_7 = arith.constant dense<0.000000e+00> : vector<16xf32>
    %15 = vector.multi_reduction <add>, %14, %cst_7 [1] : vector<16x128xf32> to vector<16xf32>
    %16 = vector.shape_cast %15 : vector<16xf32> to vector<16x1xf32>
    %cst_8 = arith.constant 1.280000e+02 : f32
    %17 = vector.broadcast %cst_8 : f32 to vector<16x1xf32>
    %18 = arith.divf %16, %17 : vector<16x1xf32>
    %19 = arith.mulf %13, %13 : vector<16x1xf32>
    %20 = arith.subf %18, %19 : vector<16x1xf32>
    %cst_9 = arith.constant 9.99999974E-6 : f32
    %21 = vector.broadcast %cst_9 : f32 to vector<16x1xf32>
    %22 = arith.addf %20, %21 : vector<16x1xf32>
    %23 = math.rsqrt %22 : vector<16x1xf32>
    %24 = vector.broadcast %23 : vector<16x1xf32> to vector<16x128xf32>
    %25 = vector.broadcast %8 : vector<1x128xf32> to vector<16x128xf32>
    %26 = arith.mulf %24, %25 : vector<16x128xf32>
    %27 = arith.mulf %6, %26 : vector<16x128xf32>
    %28 = vector.broadcast %13 : vector<16x1xf32> to vector<16x128xf32>
    %29 = arith.mulf %28, %26 : vector<16x128xf32>
    %30 = vector.broadcast %9 : vector<1x128xf32> to vector<16x128xf32>
    %31 = arith.subf %30, %29 : vector<16x128xf32>
    %32 = arith.addf %27, %31 : vector<16x128xf32>
    %c0_10 = arith.constant 0 : index
    %c0_11 = arith.constant 0 : index
    %33 = vector.load %arg5[%c0_10, %c0_11] : memref<16x128xf32, #tpu.memory_space<vmem>>, vector<16x128xf32>
    tpu.vector_store %arg5[%c0_10, %c0_11], %32 {strides = array<i32>} : memref<16x128xf32, #tpu.memory_space<vmem>>, vector<16x128xf32>,
    return
  }
  func.func @transform_0(%arg0: i32) -> (i32, i32) {
    %c0_i32 = arith.constant 0 : i32
    %c0_i32_0 = arith.constant 0 : i32
    return %arg0, %c0_i32 : i32, i32
  }
  func.func @transform_1(%arg0: i32) -> (i32, i32) {
    %c0_i32 = arith.constant 0 : i32
    %c0_i32_0 = arith.constant 0 : i32
    %c0_i32_1 = arith.constant 0 : i32
    return %c0_i32, %c0_i32_0 : i32, i32
  }
  func.func @transform_2(%arg0: i32) -> i32 {
    %c0_i32 = arith.constant 0 : i32
    %c0_i32_0 = arith.constant 0 : i32
    return %c0_i32 : i32
  }
  func.func @transform_3(%arg0: i32) -> i32 {
    %c0_i32 = arith.constant 0 : i32
    %c0_i32_0 = arith.constant 0 : i32
    return %c0_i32 : i32
  }
  func.func @transform_4(%arg0: i32) -> (i32, i32) {
    %c0_i32 = arith.constant 0 : i32
    %c0_i32_0 = arith.constant 0 : i32
    return %arg0, %c0_i32 : i32, i32
  }
}

</mosaic_0001>

<bundles_post_ra>
// kernel: word_embeddings.1
= control target key start
LH: loop header
LB: loop body
LE: loop exit
PB: predicated region body
PF: predicated region fallthrough
CT: control target
= control target key end

     0   :  { %10 = vsyncpa [#allocation5], 0  ;;  %s224_s0 = inlined_call_operand.vmem [shape: f32[16,512], index: 0, kind: input, shape index: {}]   ;;  %s225_s1 = inlined_call_operand.vmem [shape: f32[2,128], index: 1, kind: input, shape index: {}]   ;;  %s226_s2 = inlined_call_operand.vmem [shape: f32[4], index: 2, kind: input, shape index: {}]   ;;  %s227_s3 = inlined_call_operand.<no memory space> [shape: f32[1], index: 3, kind: input, shape index: {}]   ;;  %s228_s4 = inlined_call_operand.hbm [shape: f32[16,128], index: 4, kind: output, shape index: {}]  }
   0x1   :  { %11 = vsyncpa [#allocation4], 0  ;;  %s22_s17 = sshll.u32 %s226_s2, 4  ;;  %s23_s17 = int_to_ptr.vmem [resolvable:$true] %s22_s17 }
   0x2   :  { %s115_s18 = scalar_lea.vmem %s23_s17, 16  ;;  %p120_p1 = scmp.lt.s32.totalorder %s23_s17, %s23_s17 }
   0x3   :  { %p116_p0 = scmp.ne.s32.totalorder %s23_s17, %s115_s18  ;;  %p121_p2 = scmp.lt.s32.totalorder %s115_s18, %s115_s18 }
   0x5   :  { %p122_p3 = por %p121_p2, %p120_p1 }
   0x7   :  { %p123_p4 = pnand %p122_p3, %p116_p0 }
   0x9   :  { %126 = shalt.err (!%p123_p4)
}
   0xa   :  { %s153_s19 = smov [#allocation3]  }
   0xb   :  { %25 = dma.vmem_to_smem %s23_s17, 16, %s153_s19, [#allocation5]  }
   0xc   :  { %149 = dma.done.wait [#allocation5], 16  }
   0xd   :  { %150 = vsyncadd [#allocation5], 4294967280 }
   0xe   :  { %31 = sfence }
   0xf   :  { %v32_v0 = vld [vmem:[%s224_s0] sm:$0xff]  ;;  %v34_v1 = vld [vmem:[%s224_s0 + $0x8] sm:$0xff]  ;;  %v38_v2 = vld [vmem:[%s224_s0 + $0x10] sm:$0xff]  ;;  %v70_v22 = vlaneseq  ;;  %s154_s9 = smov [#allocation6]  }
  0x10   :  { %v36_v3 = vadd.f32 %v34_v1, %v32_v0  ;;  %v33_v4 = vld [vmem:[%s224_s0 + $0x20] sm:$0xff]  ;;  %v35_v5 = vld [vmem:[%s224_s0 + $0x28] sm:$0xff]  ;;  %v42_v6 = vld [vmem:[%s224_s0 + $0x18] sm:$0xff]  ;;  %s95_s10 = sshll.u32 %s154_s9, 4  ;;  %s96_s10 = int_to_ptr.vmem [resolvable:$true] %s95_s10 }
  0x11   :  { %v37_v7 = vadd.f32 %v35_v5, %v33_v4  ;;  %v39_v8 = vld [vmem:[%s224_s0 + $0x30] sm:$0xff]  ;;  %v43_v10 = vld [vmem:[%s224_s0 + $0x38] sm:$0xff]  ;;  %v71_v29 = vshrl.u32 %v70_v22, 7  ;;  %v46_v33 = vld [vmem:[%s225_s1] sm:$0x3]  ;;  %s127_s1 = scalar_lea.vmem %s96_s10, 256  ;;  %p132_p6 = scmp.lt.s32.totalorder %s96_s10, %s96_s10 }
  0x12   :  { %v40_v9 = vadd.f32 %v38_v2, %v36_v3  ;;  %p128_p5 = scmp.ne.s32.totalorder %s96_s10, %s127_s1  ;;  %p133_p7 = scmp.lt.s32.totalorder %s127_s1, %s127_s1 }
  0x13   :  { %v41_v11 = vadd.f32 %v39_v8, %v37_v7  ;;  %v72_v32 = vsub.s32 0, %v71_v29  ;;  %v82_v35 = vsub.s32 1, %v71_v29 }
  0x14   :  { %v44_v12 = vadd.f32 %v42_v6, %v40_v9  ;;  %p134_p8 = por %p133_p7, %p132_p6 }
  0x15   :  { %v45_v13 = vadd.f32 %v43_v10, %v41_v11  ;;  %v73_v34 = vrot.slane %v46_v33, %v72_v32  ;;  %v83_v38 = vrot.slane %v46_v33, %v82_v35 }
  0x16   :  { %47 = vadd.xlane.f32.xlu0 %v44_v12  ;;  %v54_v14 = vmul.f32 %v44_v12, %v44_v12  ;;  %p135_p9 = pnand %p134_p8, %p128_p5 }
  0x17   :  { %v55_v15 = vmul.f32 %v45_v13, %v45_v13 }
  0x18   :  { %56 = vadd.xlane.f32.xlu1 %v54_v14 }
  0x1a   :  { %49 = vadd.xlane.f32.xlu0 %v45_v13 }
  0x1c   :  { %58 = vadd.xlane.f32.xlu1 %v55_v15 }
  0xa3   :  { %v48_v16 = vpop.xlane.xlu0 %47 }
  0xa4   :  { %v52_v17 = vmul.f32 0.0078125, %v48_v16 }
  0xa5   :  { %v57_v18 = vpop.xlane.xlu1 %56 }
  0xa6   :  { %v62_v19 = vmul.f32 %v52_v17, %v52_v17  ;;  %v60_v20 = vmul.f32 0.0078125, %v57_v18 }
  0xa7   :  { %v50_v21 = vpop.xlane.xlu0 %49 }
  0xa8   :  { %v64_v23 = vsub.f32 %v60_v20, %v62_v19  ;;  %v53_v24 = vmul.f32 0.0078125, %v50_v21 }
  0xa9   :  { %v59_v25 = vpop.xlane.xlu1 %58 }
  0xaa   :  { %v66_v26 = vadd.f32 1e-05, %v64_v23  ;;  %v63_v27 = vmul.f32 %v53_v24, %v53_v24  ;;  %v61_v28 = vmul.f32 0.0078125, %v59_v25 }
  0xac   :  { %111 = vrsqrt.f32 %v66_v26  ;;  %v65_v30 = vsub.f32 %v61_v28, %v63_v27 }
  0xae   :  { %v67_v31 = vadd.f32 1e-05, %v65_v30 }
  0xb0   :  { %113 = vrsqrt.f32 %v67_v31 }
  0xb6   :  { %v112_v36 = vpop.eup %111 }
  0xb7   :  { %v74_v37 = vmul.f32 %v112_v36, %v73_v34 }
  0xb9   :  { %v78_v39 = vmul.f32 %v74_v37, %v52_v17  ;;  %v76_v42 = vmul.f32 %v74_v37, %v44_v12 }
  0xba   :  { %v114_v40 = vpop.eup %113 }
  0xbb   :  { %v75_v41 = vmul.f32 %v114_v40, %v73_v34  ;;  %v84_v43 = vsub.f32 %v83_v38, %v78_v39 }
  0xbd   :  { %v79_v44 = vmul.f32 %v75_v41, %v53_v24  ;;  %v86_v45 = vadd.f32 %v84_v43, %v76_v42  ;;  %v77_v46 = vmul.f32 %v75_v41, %v45_v13 }
  0xbf   :  { %v85_v47 = vsub.f32 %v83_v38, %v79_v44  ;;  %88 = vst [vmem:[#allocation6] sm:$0xff] %v86_v45 }
  0xc1   :  { %v87_v48 = vadd.f32 %v85_v47, %v77_v46 }
  0xc3   :  { %89 = vst [vmem:[#allocation6 + $0x8] sm:$0xff] %v87_v48 }
  0xc4   :  { %138 = shalt.err (!%p135_p9)
}
  0xc5   :  { %s139_s13 = scalar_lea.hbm %s228_s4, 256 }
  0xc6   :  { %p140_p10 = scmp.ne.s32.totalorder %s228_s4, %s139_s13  ;;  %p143_p11 = scmp.lt.u32.totalorder %s139_s13, %s228_s4 }
  0xc8   :  { %p145_p12 = pnand %p143_p11, %p140_p10 }
  0xca   :  { %148 = shalt.err (!%p145_p12)
}
  0xcb   :  { %s155_s18 = smov 128   ;;  %s156_s19 = smov 8  }
  0xcc   :  { %101 = dma.vmem_to_hbm [thread:$0]  %s96_s10, 256, %s228_s4, [#allocation4], %s155_s18, %s155_s18, %s156_s19  }
  0xcd   :  { %151 = dma.done.wait [#allocation4], 256  }
  0xce   :  { %152 = vsyncadd [#allocation4], 4294967040 }
  0xcf   :  { %105 = vsyncpa [#allocation4], 1 }
  0xd0   :  { %106 = vsyncpa [#allocation5], 1 }

</bundles_post_ra>
